<compile_context>
chip_gen: v6e
topology: v6e:2x2x1
jax: 0.10.0
libtpu: 0.0.40
codegen_flags: <defaults>
</compile_context>

<pallas_src>
import functools

import jax
import jax.numpy as jnp
import numpy as np
from jax import lax
from jax.experimental import pallas as pl
from jax.experimental.pallas import tpu as pltpu

LN_EPS = 1e-5
BN_EPS = 1e-5


def _conformer_pre_kernel(x_ref, lnw_ref, lnb_ref, w1_ref, b1_ref, w2_ref, b2_ref,
                          cw_ref, cb_ref, o_ref, ypad_ref, *, K, cpad):
    # Block shapes (per batch element):
    #   x_ref:  (1, T, D)   input tokens for this batch element (time on sublanes)
    #   lnw/lnb:(1, D)      LayerNorm affine
    #   w1:(D, H) b1:(1, H) first Linear (pre-transposed)
    #   w2:(H, D) b2:(1, D) second Linear (pre-transposed)
    #   cw:(K, D) cb:(1, D) depthwise conv weight/bias with BatchNorm(eval) folded in
    #   o_ref:  (1, T, D)   output
    #   ypad_ref: VMEM scratch (T + 2*cpad, D): "same"-padded conv input
    x = x_ref[0]                                           # (T, D) f32
    T, D = x.shape

    # Zero the conv halo rows exactly once (first grid step); they are never
    # written again, and the interior rows are overwritten every step.
    if cpad > 0:
        @pl.when(pl.program_id(0) == 0)
        def _zero_halo():
            zeros = jnp.zeros((cpad, D), jnp.float32)
            ypad_ref[0:cpad, :] = zeros
            ypad_ref[cpad + T:cpad + T + cpad, :] = zeros

    # ---- ff1: LayerNorm -> Linear(D,H) -> ReLU -> Linear(H,D), residual 0.5x ----
    mu = jnp.mean(x, axis=-1, keepdims=True)
    xc = x - mu
    var = jnp.mean(xc * xc, axis=-1, keepdims=True)
    h = xc * lax.rsqrt(var + LN_EPS) * lnw_ref[...] + lnb_ref[...]           # (T, D)

    h1 = jnp.dot(h, w1_ref[...], preferred_element_type=jnp.float32) + b1_ref[...]
    h1 = jnp.maximum(h1, 0.0)                                                # ReLU, (T, H)
    ff = jnp.dot(h1, w2_ref[...], preferred_element_type=jnp.float32) + b2_ref[...]
    y = x + 0.5 * ff                                                         # (T, D)

    # ---- depthwise Conv1d along time ("same" padding) + folded BN, then SiLU ----
    ypad_ref[cpad:cpad + T, :] = y

    cw = cw_ref[...]                                                         # (K, D)
    acc = ypad_ref[0:T, :] * cw[0:1, :]
    for k in range(1, K):                                                    # static unroll
        acc = acc + ypad_ref[k:k + T, :] * cw[k:k + 1, :]
    z = acc + cb_ref[...]                                                    # conv + BN(eval)
    o_ref[0] = z * jax.nn.sigmoid(z)                                         # SiLU


def conformer_pre_block(params, x):
    """x: (T, B, D) float32 -> (T, B, D) float32 (eval-mode forward)."""
    T, B, D = x.shape
    H = params["w1"].shape[0]
    K = params["conv_w"].shape[2]
    cpad = K // 2

    # ---- wrapper-side weight folding / layout prep (plain JAX, O(weights)) ----
    bn_scale = params["bn_gamma"] / jnp.sqrt(params["bn_var"] + BN_EPS)      # (D,)
    bn_shift = params["bn_beta"] - params["bn_mean"] * bn_scale              # (D,)
    # depthwise conv weight (D,1,K) -> (K,D), with BN scale folded per channel
    cw = jnp.transpose(params["conv_w"][:, 0, :], (1, 0)) * bn_scale[None, :]
    cb = (params["conv_b"] * bn_scale + bn_shift).reshape(1, D)

    x_btd = jnp.transpose(x, (1, 0, 2)).astype(jnp.float32)                  # (B, T, D)
    lnw = params["ln_w"].reshape(1, D).astype(jnp.float32)
    lnb = params["ln_b"].reshape(1, D).astype(jnp.float32)
    w1 = jnp.transpose(params["w1"]).astype(jnp.float32)                     # (D, H)
    b1 = params["b1"].reshape(1, H).astype(jnp.float32)
    w2 = jnp.transpose(params["w2"]).astype(jnp.float32)                     # (H, D)
    b2 = params["b2"].reshape(1, D).astype(jnp.float32)

    grid_spec = pltpu.PrefetchScalarGridSpec(
        num_scalar_prefetch=0,
        grid=(B,),
        in_specs=[
            pl.BlockSpec((1, T, D), lambda b: (b, 0, 0)),   # x (per batch)
            pl.BlockSpec((1, D), lambda b: (0, 0)),         # ln weight
            pl.BlockSpec((1, D), lambda b: (0, 0)),         # ln bias
            pl.BlockSpec((D, H), lambda b: (0, 0)),         # W1^T
            pl.BlockSpec((1, H), lambda b: (0, 0)),         # b1
            pl.BlockSpec((H, D), lambda b: (0, 0)),         # W2^T
            pl.BlockSpec((1, D), lambda b: (0, 0)),         # b2
            pl.BlockSpec((K, D), lambda b: (0, 0)),         # folded conv weight
            pl.BlockSpec((1, D), lambda b: (0, 0)),         # folded conv bias + BN shift
        ],
        out_specs=pl.BlockSpec((1, T, D), lambda b: (b, 0, 0)),
        scratch_shapes=[pltpu.VMEM((T + 2 * cpad, D), jnp.float32)],
    )

    out_btd = pl.pallas_call(
        functools.partial(_conformer_pre_kernel, K=K, cpad=cpad),
        out_shape=jax.ShapeDtypeStruct((B, T, D), jnp.float32),
        grid_spec=grid_spec,
        compiler_params=pltpu.CompilerParams(dimension_semantics=("parallel",)),
    )(x_btd, lnw, lnb, w1, b1, w2, b2, cw, cb)

    return jnp.transpose(out_btd, (1, 0, 2))                                 # (T, B, D)


def reference(params, x):
    """Pure-JAX re-implementation of the PyTorch forward (eval mode)."""
    T, B, D = x.shape
    K = params["conv_w"].shape[2]
    cpad = K // 2

    mu = jnp.mean(x, axis=-1, keepdims=True)
    var = jnp.mean((x - mu) ** 2, axis=-1, keepdims=True)
    h = (x - mu) / jnp.sqrt(var + LN_EPS) * params["ln_w"] + params["ln_b"]
    h1 = jax.nn.relu(h @ params["w1"].T + params["b1"])
    ff = h1 @ params["w2"].T + params["b2"]
    y = x + 0.5 * ff                                        # (T, B, D)

    yc = jnp.transpose(y, (1, 2, 0))                        # (B, D, T)
    ypad = jnp.pad(yc, ((0, 0), (0, 0), (cpad, cpad)))
    w = params["conv_w"][:, 0, :]                           # (D, K)
    conv = sum(ypad[:, :, k:k + T] * w[None, :, k:k + 1] for k in range(K))
    conv = conv + params["conv_b"][None, :, None]
    scale = params["bn_gamma"] / jnp.sqrt(params["bn_var"] + BN_EPS)
    bn = (conv - params["bn_mean"][None, :, None]) * scale[None, :, None] \
        + params["bn_beta"][None, :, None]
    out = bn * jax.nn.sigmoid(bn)                           # SiLU
    return jnp.transpose(out, (2, 0, 1))                    # (T, B, D)


def init_params(key, D, mult, K):
    H = mult * D
    ks = jax.random.split(key, 12)
    return {
        "ln_w": 1.0 + 0.1 * jax.random.normal(ks[0], (D,), jnp.float32),
        "ln_b": 0.1 * jax.random.normal(ks[1], (D,), jnp.float32),
        "w1": jax.random.normal(ks[2], (H, D), jnp.float32) / np.sqrt(D),
        "b1": 0.1 * jax.random.normal(ks[3], (H,), jnp.float32),
        "w2": jax.random.normal(ks[4], (D, H), jnp.float32) / np.sqrt(H),
        "b2": 0.1 * jax.random.normal(ks[5], (D,), jnp.float32),
        "conv_w": jax.random.normal(ks[6], (D, 1, K), jnp.float32) / np.sqrt(K),
        "conv_b": 0.1 * jax.random.normal(ks[7], (D,), jnp.float32),
        "bn_gamma": 1.0 + 0.1 * jax.random.normal(ks[8], (D,), jnp.float32),
        "bn_beta": 0.1 * jax.random.normal(ks[9], (D,), jnp.float32),
        "bn_mean": 0.1 * jax.random.normal(ks[10], (D,), jnp.float32),
        "bn_var": jax.nn.softplus(jax.random.normal(ks[11], (D,), jnp.float32)) + 0.5,
    }


if __name__ == "__main__":
    # Small config consistent with the module:
    #   dim_model=32, ff_multiplier=4 (hidden=128), conv_kernel_size=7, seq=16, batch=2
    T, B, D, MULT, K = 16, 2, 32, 4, 7

    params = init_params(jax.random.PRNGKey(0), D, MULT, K)
    x = jax.random.normal(jax.random.PRNGKey(1), (T, B, D), jnp.float32)

    out = jax.jit(conformer_pre_block)(params, x)
    jax.block_until_ready(out)

    ref = reference(params, x)
    np.testing.assert_allclose(np.asarray(out), np.asarray(ref), rtol=2e-2, atol=2e-2)

    print("KERNEL_OK")
</pallas_src>

<mosaic_0001>
module attributes {stable_mosaic.version = 11 : i64} {
  func.func @_conformer_pre_kernel(%arg0: i32, %arg1: memref<1x16x32xf32, #tpu.memory_space<vmem>>, %arg2: memref<1x32xf32, #tpu.memory_space<vmem>>, %arg3: memref<1x32xf32, #tpu.memory_space<vmem>>, %arg4: memref<32x128xf32, #tpu.memory_space<vmem>>, %arg5: memref<1x128xf32, #tpu.memory_space<vmem>>, %arg6: memref<128x32xf32, #tpu.memory_space<vmem>>, %arg7: memref<1x32xf32, #tpu.memory_space<vmem>>, %arg8: memref<7x32xf32, #tpu.memory_space<vmem>>, %arg9: memref<1x32xf32, #tpu.memory_space<vmem>>, %arg10: memref<1x16x32xf32, #tpu.memory_space<vmem>>, %arg11: memref<22x32xf32, #tpu.memory_space<vmem>>) attributes {dimension_semantics = [#tpu.dimension_semantics<parallel>], iteration_bounds = array<i64: 2>, scalar_prefetch = 0 : i64, scratch_operands = 1 : i64, tpu.core_type = #tpu.core_type<tc>, window_params = [{transform_indices = @transform_0, window_bounds = array<i64: 1, 16, 32>}, {pipeline_mode = #tpu.pipeline_mode<synchronous>, transform_indices = @transform_1, window_bounds = array<i64: 1, 32>}, {pipeline_mode = #tpu.pipeline_mode<synchronous>, transform_indices = @transform_2, window_bounds = array<i64: 1, 32>}, {pipeline_mode = #tpu.pipeline_mode<synchronous>, transform_indices = @transform_3, window_bounds = array<i64: 32, 128>}, {pipeline_mode = #tpu.pipeline_mode<synchronous>, transform_indices = @transform_4, window_bounds = array<i64: 1, 128>}, {pipeline_mode = #tpu.pipeline_mode<synchronous>, transform_indices = @transform_5, window_bounds = array<i64: 128, 32>}, {pipeline_mode = #tpu.pipeline_mode<synchronous>, transform_indices = @transform_6, window_bounds = array<i64: 1, 32>}, {pipeline_mode = #tpu.pipeline_mode<synchronous>, transform_indices = @transform_7, window_bounds = array<i64: 7, 32>}, {pipeline_mode = #tpu.pipeline_mode<synchronous>, transform_indices = @transform_8, window_bounds = array<i64: 1, 32>}, {transform_indices = @transform_9, window_bounds = array<i64: 1, 16, 32>}]} {
    %c0 = arith.constant 0 : index
    %c0_0 = arith.constant 0 : index
    %c0_1 = arith.constant 0 : index
    %0 = vector.load %arg1[%c0, %c0_0, %c0_1] : memref<1x16x32xf32, #tpu.memory_space<vmem>>, vector<1x16x32xf32>
    %1 = vector.shape_cast %0 : vector<1x16x32xf32> to vector<16x32xf32>
    %c0_i32 = arith.constant 0 : i32
    %2 = arith.cmpi eq, %arg0, %c0_i32 : i32
    %3 = arith.extui %2 : i1 to i32
    %c0_i32_2 = arith.constant 0 : i32
    %4 = arith.cmpi ne, %3, %c0_i32_2 : i32
    scf.if %4 {
      %cst_41 = arith.constant 0.000000e+00 : f32
      %90 = vector.broadcast %cst_41 : f32 to vector<3x32xf32>
      %c0_42 = arith.constant 0 : index
      %c0_43 = arith.constant 0 : index
      %91 = vector.load %arg11[%c0_42, %c0_43] : memref<22x32xf32, #tpu.memory_space<vmem>>, vector<3x32xf32>
      tpu.vector_store %arg11[%c0_42, %c0_43], %90 {strides = array<i32>} : memref<22x32xf32, #tpu.memory_space<vmem>>, vector<3x32xf32>,
      %c19 = arith.constant 19 : index
      %c0_44 = arith.constant 0 : index
      %92 = vector.load %arg11[%c19, %c0_44] : memref<22x32xf32, #tpu.memory_space<vmem>>, vector<3x32xf32>
      tpu.vector_store %arg11[%c19, %c0_44], %90 {strides = array<i32>} : memref<22x32xf32, #tpu.memory_space<vmem>>, vector<3x32xf32>,
    } else {
    }
    %cst = arith.constant dense<0.000000e+00> : vector<16xf32>
    %5 = vector.multi_reduction <add>, %1, %cst [1] : vector<16x32xf32> to vector<16xf32>
    %6 = vector.shape_cast %5 : vector<16xf32> to vector<16x1xf32>
    %cst_3 = arith.constant 3.200000e+01 : f32
    %7 = vector.broadcast %cst_3 : f32 to vector<16x1xf32>
    %8 = arith.divf %6, %7 : vector<16x1xf32>
    %9 = vector.broadcast %8 : vector<16x1xf32> to vector<16x32xf32>
    %10 = arith.subf %1, %9 : vector<16x32xf32>
    %11 = arith.mulf %10, %10 : vector<16x32xf32>
    %cst_4 = arith.constant dense<0.000000e+00> : vector<16xf32>
    %12 = vector.multi_reduction <add>, %11, %cst_4 [1] : vector<16x32xf32> to vector<16xf32>
    %13 = vector.shape_cast %12 : vector<16xf32> to vector<16x1xf32>
    %cst_5 = arith.constant 3.200000e+01 : f32
    %14 = vector.broadcast %cst_5 : f32 to vector<16x1xf32>
    %15 = arith.divf %13, %14 : vector<16x1xf32>
    %cst_6 = arith.constant 9.99999974E-6 : f32
    %16 = vector.broadcast %cst_6 : f32 to vector<16x1xf32>
    %17 = arith.addf %15, %16 : vector<16x1xf32>
    %18 = math.rsqrt %17 : vector<16x1xf32>
    %19 = vector.broadcast %18 : vector<16x1xf32> to vector<16x32xf32>
    %20 = arith.mulf %10, %19 : vector<16x32xf32>
    %c0_7 = arith.constant 0 : index
    %c0_8 = arith.constant 0 : index
    %21 = vector.load %arg2[%c0_7, %c0_8] : memref<1x32xf32, #tpu.memory_space<vmem>>, vector<1x32xf32>
    %22 = vector.broadcast %21 : vector<1x32xf32> to vector<16x32xf32>
    %23 = arith.mulf %20, %22 : vector<16x32xf32>
    %c0_9 = arith.constant 0 : index
    %c0_10 = arith.constant 0 : index
    %24 = vector.load %arg3[%c0_9, %c0_10] : memref<1x32xf32, #tpu.memory_space<vmem>>, vector<1x32xf32>
    %25 = vector.broadcast %24 : vector<1x32xf32> to vector<16x32xf32>
    %26 = arith.addf %23, %25 : vector<16x32xf32>
    %c0_11 = arith.constant 0 : index
    %c0_12 = arith.constant 0 : index
    %27 = vector.load %arg4[%c0_11, %c0_12] : memref<32x128xf32, #tpu.memory_space<vmem>>, vector<32x128xf32>
    %cst_13 = arith.constant dense<0.000000e+00> : vector<16x128xf32>
    %28 = tpu.matmul %26, %27, %cst_13 {dimension_numbers = #tpu.dot_dimension_numbers<[1], [0], [0], [1], [0, 0, 1, 1], [], []>} : vector<16x32xf32>, vector<32x128xf32>, vector<16x128xf32> -> vector<16x128xf32>
    %c0_14 = arith.constant 0 : index
    %c0_15 = arith.constant 0 : index
    %29 = vector.load %arg5[%c0_14, %c0_15] : memref<1x128xf32, #tpu.memory_space<vmem>>, vector<1x128xf32>
    %30 = vector.broadcast %29 : vector<1x128xf32> to vector<16x128xf32>
    %31 = arith.addf %28, %30 : vector<16x128xf32>
    %cst_16 = arith.constant 0.000000e+00 : f32
    %32 = vector.broadcast %cst_16 : f32 to vector<16x128xf32>
    %33 = arith.maximumf %31, %32 : vector<16x128xf32>
    %c0_17 = arith.constant 0 : index
    %c0_18 = arith.constant 0 : index
    %34 = vector.load %arg6[%c0_17, %c0_18] : memref<128x32xf32, #tpu.memory_space<vmem>>, vector<128x32xf32>
    %cst_19 = arith.constant dense<0.000000e+00> : vector<16x32xf32>
    %35 = tpu.matmul %33, %34, %cst_19 {dimension_numbers = #tpu.dot_dimension_numbers<[1], [0], [0], [1], [0, 0, 1, 1], [], []>} : vector<16x128xf32>, vector<128x32xf32>, vector<16x32xf32> -> vector<16x32xf32>
    %c0_20 = arith.constant 0 : index
    %c0_21 = arith.constant 0 : index
    %36 = vector.load %arg7[%c0_20, %c0_21] : memref<1x32xf32, #tpu.memory_space<vmem>>, vector<1x32xf32>
    %37 = vector.broadcast %36 : vector<1x32xf32> to vector<16x32xf32>
    %38 = arith.addf %35, %37 : vector<16x32xf32>
    %cst_22 = arith.constant 5.000000e-01 : f32
    %39 = vector.broadcast %cst_22 : f32 to vector<16x32xf32>
    %40 = arith.mulf %39, %38 : vector<16x32xf32>
    %41 = arith.addf %1, %40 : vector<16x32xf32>
    %c3 = arith.constant 3 : index
    %c0_23 = arith.constant 0 : index
    %42 = vector.load %arg11[%c3, %c0_23] : memref<22x32xf32, #tpu.memory_space<vmem>>, vector<16x32xf32>
    tpu.vector_store %arg11[%c3, %c0_23], %41 {strides = array<i32>} : memref<22x32xf32, #tpu.memory_space<vmem>>, vector<16x32xf32>,
    %c0_24 = arith.constant 0 : index
    %c0_25 = arith.constant 0 : index
    %43 = vector.load %arg8[%c0_24, %c0_25] : memref<7x32xf32, #tpu.memory_space<vmem>>, vector<7x32xf32>
    %c0_26 = arith.constant 0 : index
    %c0_27 = arith.constant 0 : index
    %44 = vector.load %arg11[%c0_26, %c0_27] : memref<22x32xf32, #tpu.memory_space<vmem>>, vector<16x32xf32>
    %45 = vector.extract_strided_slice %43 {offsets = [0, 0], sizes = [1, 32], strides = [1, 1]} : vector<7x32xf32> to vector<1x32xf32>
    %46 = vector.broadcast %45 : vector<1x32xf32> to vector<16x32xf32>
    %47 = arith.mulf %44, %46 : vector<16x32xf32>
    %c1 = arith.constant 1 : index
    %c0_28 = arith.constant 0 : index
    %48 = vector.load %arg11[%c1, %c0_28] : memref<22x32xf32, #tpu.memory_space<vmem>>, vector<16x32xf32>
    %49 = vector.extract_strided_slice %43 {offsets = [1, 0], sizes = [1, 32], strides = [1, 1]} : vector<7x32xf32> to vector<1x32xf32>
    %50 = vector.broadcast %49 : vector<1x32xf32> to vector<16x32xf32>
    %51 = arith.mulf %48, %50 : vector<16x32xf32>
    %52 = arith.addf %47, %51 : vector<16x32xf32>
    %c2 = arith.constant 2 : index
    %c0_29 = arith.constant 0 : index
    %53 = vector.load %arg11[%c2, %c0_29] : memref<22x32xf32, #tpu.memory_space<vmem>>, vector<16x32xf32>
    %54 = vector.extract_strided_slice %43 {offsets = [2, 0], sizes = [1, 32], strides = [1, 1]} : vector<7x32xf32> to vector<1x32xf32>
    %55 = vector.broadcast %54 : vector<1x32xf32> to vector<16x32xf32>
    %56 = arith.mulf %53, %55 : vector<16x32xf32>
    %57 = arith.addf %52, %56 : vector<16x32xf32>
    %c3_30 = arith.constant 3 : index
    %c0_31 = arith.constant 0 : index
    %58 = vector.load %arg11[%c3_30, %c0_31] : memref<22x32xf32, #tpu.memory_space<vmem>>, vector<16x32xf32>
    %59 = vector.extract_strided_slice %43 {offsets = [3, 0], sizes = [1, 32], strides = [1, 1]} : vector<7x32xf32> to vector<1x32xf32>
    %60 = vector.broadcast %59 : vector<1x32xf32> to vector<16x32xf32>
    %61 = arith.mulf %58, %60 : vector<16x32xf32>
    %62 = arith.addf %57, %61 : vector<16x32xf32>
    %c4 = arith.constant 4 : index
    %c0_32 = arith.constant 0 : index
    %63 = vector.load %arg11[%c4, %c0_32] : memref<22x32xf32, #tpu.memory_space<vmem>>, vector<16x32xf32>
    %64 = vector.extract_strided_slice %43 {offsets = [4, 0], sizes = [1, 32], strides = [1, 1]} : vector<7x32xf32> to vector<1x32xf32>
    %65 = vector.broadcast %64 : vector<1x32xf32> to vector<16x32xf32>
    %66 = arith.mulf %63, %65 : vector<16x32xf32>
    %67 = arith.addf %62, %66 : vector<16x32xf32>
    %c5 = arith.constant 5 : index
    %c0_33 = arith.constant 0 : index
    %68 = vector.load %arg11[%c5, %c0_33] : memref<22x32xf32, #tpu.memory_space<vmem>>, vector<16x32xf32>
    %69 = vector.extract_strided_slice %43 {offsets = [5, 0], sizes = [1, 32], strides = [1, 1]} : vector<7x32xf32> to vector<1x32xf32>
    %70 = vector.broadcast %69 : vector<1x32xf32> to vector<16x32xf32>
    %71 = arith.mulf %68, %70 : vector<16x32xf32>
    %72 = arith.addf %67, %71 : vector<16x32xf32>
    %c6 = arith.constant 6 : index
    %c0_34 = arith.constant 0 : index
    %73 = vector.load %arg11[%c6, %c0_34] : memref<22x32xf32, #tpu.memory_space<vmem>>, vector<16x32xf32>
    %74 = vector.extract_strided_slice %43 {offsets = [6, 0], sizes = [1, 32], strides = [1, 1]} : vector<7x32xf32> to vector<1x32xf32>
    %75 = vector.broadcast %74 : vector<1x32xf32> to vector<16x32xf32>
    %76 = arith.mulf %73, %75 : vector<16x32xf32>
    %77 = arith.addf %72, %76 : vector<16x32xf32>
    %c0_35 = arith.constant 0 : index
    %c0_36 = arith.constant 0 : index
    %78 = vector.load %arg9[%c0_35, %c0_36] : memref<1x32xf32, #tpu.memory_space<vmem>>, vector<1x32xf32>
    %79 = vector.broadcast %78 : vector<1x32xf32> to vector<16x32xf32>
    %80 = arith.addf %77, %79 : vector<16x32xf32>
    %81 = arith.negf %80 : vector<16x32xf32>
    %82 = math.exp %81 : vector<16x32xf32>
    %cst_37 = arith.constant 1.000000e+00 : f32
    %83 = vector.broadcast %cst_37 : f32 to vector<16x32xf32>
    %84 = arith.addf %83, %82 : vector<16x32xf32>
    %85 = arith.divf %83, %84 : vector<16x32xf32>
    %86 = arith.mulf %80, %85 : vector<16x32xf32>
    %c0_38 = arith.constant 0 : index
    %c0_39 = arith.constant 0 : index
    %c0_40 = arith.constant 0 : index
    %87 = vector.load %arg10[%c0_38, %c0_39, %c0_40] : memref<1x16x32xf32, #tpu.memory_space<vmem>>, vector<1x16x32xf32>
    %88 = vector.shape_cast %87 : vector<1x16x32xf32> to vector<16x32xf32>
    %89 = vector.shape_cast %86 : vector<16x32xf32> to vector<1x16x32xf32>
    tpu.vector_store %arg10[%c0_38, %c0_39, %c0_40], %89 {strides = array<i32>} : memref<1x16x32xf32, #tpu.memory_space<vmem>>, vector<1x16x32xf32>,
    return
  }
  func.func @transform_0(%arg0: i32) -> (i32, i32, i32) {
    %c0_i32 = arith.constant 0 : i32
    %c0_i32_0 = arith.constant 0 : i32
    %c0_i32_1 = arith.constant 0 : i32
    return %arg0, %c0_i32, %c0_i32_0 : i32, i32, i32
  }
  func.func @transform_1(%arg0: i32) -> (i32, i32) {
    %c0_i32 = arith.constant 0 : i32
    %c0_i32_0 = arith.constant 0 : i32
    %c0_i32_1 = arith.constant 0 : i32
    return %c0_i32, %c0_i32_0 : i32, i32
  }
  func.func @transform_2(%arg0: i32) -> (i32, i32) {
    %c0_i32 = arith.constant 0 : i32
    %c0_i32_0 = arith.constant 0 : i32
    %c0_i32_1 = arith.constant 0 : i32
    return %c0_i32, %c0_i32_0 : i32, i32
  }
  func.func @transform_3(%arg0: i32) -> (i32, i32) {
    %c0_i32 = arith.constant 0 : i32
    %c0_i32_0 = arith.constant 0 : i32
    %c0_i32_1 = arith.constant 0 : i32
    return %c0_i32, %c0_i32_0 : i32, i32
  }
  func.func @transform_4(%arg0: i32) -> (i32, i32) {
    %c0_i32 = arith.constant 0 : i32
    %c0_i32_0 = arith.constant 0 : i32
    %c0_i32_1 = arith.constant 0 : i32
    return %c0_i32, %c0_i32_0 : i32, i32
  }
  func.func @transform_5(%arg0: i32) -> (i32, i32) {
    %c0_i32 = arith.constant 0 : i32
    %c0_i32_0 = arith.constant 0 : i32
    %c0_i32_1 = arith.constant 0 : i32
    return %c0_i32, %c0_i32_0 : i32, i32
  }
  func.func @transform_6(%arg0: i32) -> (i32, i32) {
    %c0_i32 = arith.constant 0 : i32
    %c0_i32_0 = arith.constant 0 : i32
    %c0_i32_1 = arith.constant 0 : i32
    return %c0_i32, %c0_i32_0 : i32, i32
  }
  func.func @transform_7(%arg0: i32) -> (i32, i32) {
    %c0_i32 = arith.constant 0 : i32
    %c0_i32_0 = arith.constant 0 : i32
    %c0_i32_1 = arith.constant 0 : i32
    return %c0_i32, %c0_i32_0 : i32, i32
  }
  func.func @transform_8(%arg0: i32) -> (i32, i32) {
    %c0_i32 = arith.constant 0 : i32
    %c0_i32_0 = arith.constant 0 : i32
    %c0_i32_1 = arith.constant 0 : i32
    return %c0_i32, %c0_i32_0 : i32, i32
  }
  func.func @transform_9(%arg0: i32) -> (i32, i32, i32) {
    %c0_i32 = arith.constant 0 : i32
    %c0_i32_0 = arith.constant 0 : i32
    %c0_i32_1 = arith.constant 0 : i32
    return %arg0, %c0_i32, %c0_i32_0 : i32, i32, i32
  }
}

</mosaic_0001>

<bundles_post_ra>
// kernel: conformer_pre_block.1
= control target key start
LH: loop header
LB: loop body
LE: loop exit
PB: predicated region body
PF: predicated region fallthrough
CT: control target
= control target key end

     0   :  { %s908_s30 = smov 0   ;;  %s1037_s0 = inlined_call_operand.vmem [shape: f32[2,16,32], index: 0, kind: input, shape index: {}]   ;;  %s1038_s1 = inlined_call_operand.vmem [shape: f32[1,32], index: 1, kind: input, shape index: {}]   ;;  %s1039_s2 = inlined_call_operand.vmem [shape: f32[1,32], index: 2, kind: input, shape index: {}]   ;;  %s1040_s3 = inlined_call_operand.vmem [shape: f32[32,128], index: 3, kind: input, shape index: {}]   ;;  %s1041_s4 = inlined_call_operand.vmem [shape: f32[1,128], index: 4, kind: input, shape index: {}]   ;;  %s1042_s5 = inlined_call_operand.vmem [shape: f32[128,32], index: 5, kind: input, shape index: {}]   ;;  %s1043_s6 = inlined_call_operand.vmem [shape: f32[1,32], index: 6, kind: input, shape index: {}]   ;;  %s1044_s7 = inlined_call_operand.vmem [shape: f32[7,32], index: 7, kind: input, shape index: {}]   ;;  %s1045_s8 = inlined_call_operand.vmem [shape: f32[1,32], index: 8, kind: input, shape index: {}]   ;;  %s1046_s9 = inlined_call_operand.vmem [shape: f32[2,16,32], index: 9, kind: output, shape index: {}]  }
   0x1 LB: > { %s735_s10 = sadd.s32 4294967295, %s855_s30   ;;  %p739_p0 = scmp.ge.s32.totalorder %s855_s30, 1  ;;  %s855_s30 = sphi %s908_s30, %s19_s30  }
   0x2   : > { %p287_p1 = scmp.lt.s32.totalorder %s855_s30, 3 }
   0x4   : > { %p288_p2 = pnand %p739_p0, %p287_p1 }
   0x5   : > { %p323_p3 = scmp.lt.s32.totalorder (!%p288_p2), %s735_s10, 1  ;;  %p744_p4 = scmp.ne.s32.totalorder (!%p288_p2), %s735_s10, 0 }
   0x6   : > { %291 = sbr.rel (%p288_p2) target bundleno = 794 (0x31a), region = 56 }
   0xb   : > { %s324_s11 = scalar_select %p323_p3, %s735_s10, 1 }
   0xc   : > { %338 = sbr.rel (%p744_p4) target bundleno = 19 (0x13), region = 60 }
   0xd   : > { %s756_s12 = sshll.u32 %s324_s11, 4 }
   0xe   : > { %s327_s15 = scalar_lea.vmem %s1037_s0, %s756_s12  ;;  %s922_s18 = scalar_lea.vmem %s1046_s9, %s756_s12 }
   0xf   : > { %v924_v0 = vld [vmem:[%s327_s15] sm:$0xff]  ;;  %v926_v1 = vld [vmem:[%s327_s15 + $0x8] sm:$0xff] }
  0x11   : > { %vm339_vm0 = vcmask 256000   ;;  %v857_v2 = vmov 0.0  }
  0x12   : > { %340 = vst.msk [vmem:[#allocation2] sm:$0x7] %vm339_vm0, %v857_v2  ;;  %341 = vst.msk [vmem:[#allocation2 + $0x13] sm:$0x7] %vm339_vm0, %v857_v2 }
  0x13 PF: > { %vm342_vm1 = vcmask 261120   ;;  %v391_v15 = vld [vmem:[%s1040_s3 + $0x18] sm:$0xff]  ;;  %v390_v16 = vld [vmem:[%s1040_s3 + $0x10] sm:$0xff]  ;;  %v389_v17 = vld [vmem:[%s1040_s3 + $0x8] sm:$0xff]  ;;  %v589_v63 = vlaneseq }
  0x14   : > { %v343_v3 = vsel %vm342_vm1, %v924_v0, 0.0  ;;  %v346_v4 = vsel %vm342_vm1, %v926_v1, 0.0  ;;  %782 = vmatprep.subr.mxu0 %v391_v15  ;;  %v388_v18 = vld [vmem:[%s1040_s3] sm:$0xff]  ;;  %v497_v19 = vld [vmem:[%s1042_s5 + $0x78] sm:$0xff]  ;;  %v496_v20 = vld [vmem:[%s1042_s5 + $0x70] sm:$0xff] }
  0x15   : > { %344 = vadd.xlane.f32.xlu0 %v343_v3  ;;  %783 = vmatpush3.msra.mxu0 %v391_v15  ;;  %v495_v21 = vld [vmem:[%s1042_s5 + $0x68] sm:$0xff]  ;;  %v494_v22 = vld [vmem:[%s1042_s5 + $0x60] sm:$0xff]  ;;  %v493_v23 = vld [vmem:[%s1042_s5 + $0x58] sm:$0xff] }
  0x16   : > { %784 = vmatprep.subr.mxu0 %v390_v16  ;;  %793 = vmatprep.subr.mxu1 %v497_v19  ;;  %v492_v24 = vld [vmem:[%s1042_s5 + $0x50] sm:$0xff]  ;;  %v491_v25 = vld [vmem:[%s1042_s5 + $0x48] sm:$0xff]  ;;  %v490_v26 = vld [vmem:[%s1042_s5 + $0x40] sm:$0xff] }
  0x17   : > { %785 = vmatpush3.msra.mxu0 %v390_v16  ;;  %794 = vmatpush3.msra.mxu1 %v497_v19  ;;  %v489_v27 = vld [vmem:[%s1042_s5 + $0x38] sm:$0xff]  ;;  %v488_v28 = vld [vmem:[%s1042_s5 + $0x30] sm:$0xff]  ;;  %v487_v29 = vld [vmem:[%s1042_s5 + $0x28] sm:$0xff] }
  0x18   : > { %786 = vmatprep.subr.mxu0 %v389_v17  ;;  %795 = vmatprep.subr.mxu1 %v496_v20  ;;  %v486_v30 = vld [vmem:[%s1042_s5 + $0x20] sm:$0xff]  ;;  %v485_v47 = vld [vmem:[%s1042_s5 + $0x18] sm:$0xff]  ;;  %v484_v48 = vld [vmem:[%s1042_s5 + $0x10] sm:$0xff] }
  0x19   : > { %347 = vadd.xlane.f32.xlu0 %v346_v4  ;;  %787 = vmatpush3.msra.mxu0 %v389_v17  ;;  %v745_v38 = vld [vmem:[%s1038_s1] ss:$0 sm:$0xff]  ;;  %v483_v49 = vld [vmem:[%s1042_s5 + $0x8] sm:$0xff] }
  0x1a   : > { %788 = vmatprep.subr.mxu0 %v388_v18  ;;  %796 = vmatpush3.msra.mxu1 %v496_v20  ;;  %v746_v40 = vld [vmem:[%s1039_s2] ss:$0 sm:$0xff] }
  0x1b   : > { %789 = vmatpush3.msra.mxu0 %v388_v18  ;;  %797 = vmatprep.subr.mxu1 %v495_v21  ;;  %v482_v50 = vld [vmem:[%s1042_s5] sm:$0xff] }
  0x1c   : > { %798 = vmatpush3.msra.mxu1 %v495_v21  ;;  %v747_v51 = vld [vmem:[%s1041_s4] ss:$0 sm:$0xff] }
  0x1d   : > { %799 = vmatprep.subr.mxu1 %v494_v22  ;;  %v750_v58 = vld [vmem:[%s1043_s6] ss:$0 sm:$0xff] }
  0x1e   : > { %800 = vmatpush3.msra.mxu1 %v494_v22 }
  0x1f   : > { %801 = vmatprep.subr.mxu1 %v493_v23 }
  0x20   : > { %802 = vmatpush3.msra.mxu1 %v493_v23 }
  0x21   : > { %803 = vmatprep.subr.mxu1 %v492_v24 }
  0x22   : > { %804 = vmatpush3.msra.mxu1 %v492_v24 }
  0x23   : > { %805 = vmatprep.subr.mxu1 %v491_v25 }
  0x24   : > { %806 = vmatpush3.msra.mxu1 %v491_v25 }
  0x25   : > { %807 = vmatprep.subr.mxu1 %v490_v26 }
  0x26   : > { %808 = vmatpush3.msra.mxu1 %v490_v26 }
  0x27   : > { %809 = vmatprep.subr.mxu1 %v489_v27 }
  0x28   : > { %810 = vmatpush3.msra.mxu1 %v489_v27 }
  0x29   : > { %811 = vmatprep.subr.mxu1 %v488_v28 }
  0x2a   : > { %812 = vmatpush3.msra.mxu1 %v488_v28 }
  0x2b   : > { %813 = vmatprep.subr.mxu1 %v487_v29 }
  0x2c   : > { %814 = vmatpush3.msra.mxu1 %v487_v29 }
  0x2d   : > { %815 = vmatprep.subr.mxu1 %v486_v30 }
  0x2e   : > { %816 = vmatpush3.msra.mxu1 %v486_v30 }
  0x2f   : > { %817 = vmatprep.subr.mxu1 %v485_v47 }
  0x30   : > { %818 = vmatpush3.msra.mxu1 %v485_v47 }
  0x31   : > { %819 = vmatprep.subr.mxu1 %v484_v48 }
  0x32   : > { %820 = vmatpush3.msra.mxu1 %v484_v48 }
  0x33   : > { %821 = vmatprep.subr.mxu1 %v483_v49 }
  0x34   : > { %822 = vmatpush3.msra.mxu1 %v483_v49 }
  0x35   : > { %823 = vmatprep.subr.mxu1 %v482_v50 }
  0x36   : > { %824 = vmatpush3.msra.mxu1 %v482_v50 }
  0x9e   : > { %v345_v5 = vpop.xlane.xlu0 %344 }
  0x9f   : > { %v350_v6 = vmul.f32 0.03125, %v345_v5  ;;  %v590_v5 = vshrl.u32 %v589_v63, 7 }
  0xa1   : > { %v933_v7 = vsub.f32 %v924_v0, %v350_v6  ;;  %v639_v24 = vsub.s32 5, %v590_v5 }
  0xa2   : > { %v348_v8 = vpop.xlane.xlu0 %347 }
  0xa3   : > { %v351_v9 = vmul.f32 0.03125, %v348_v8  ;;  %v354_v10 = vmul.f32 %v933_v7, %v933_v7  ;;  %v599_v8 = vsub.s32 1, %v590_v5 }
  0xa5   : > { %v938_v11 = vsub.f32 %v926_v1, %v351_v9  ;;  %v356_v12 = vsel %vm342_vm1, %v354_v10, 0.0  ;;  %v609_v9 = vsub.s32 2, %v590_v5  ;;  %v586_v10 = vld [vmem:[%s1044_s7] sm:$0x7f] }
  0xa6   : > { %357 = vadd.xlane.f32.xlu1 %v356_v12  ;;  %v600_v12 = vrot.slane %v586_v10, %v599_v8 }
  0xa7   : > { %v355_v13 = vmul.f32 %v938_v11, %v938_v11 }
  0xa9   : > { %v359_v14 = vsel %vm342_vm1, %v355_v13, 0.0  ;;  %v619_v13 = vsub.s32 3, %v590_v5 }
  0xaa   : > { %360 = vadd.xlane.f32.xlu1 %v359_v14  ;;  %v610_v14 = vrot.slane %v586_v10, %v609_v9 }
  0xab   : > { %v620_v23 = vrot.slane %v586_v10, %v619_v13 }
 0x12f   : > { %v358_v31 = vpop.xlane.xlu1 %357 }
 0x130   : > { %v362_v32 = vmul.f32 0.03125, %v358_v31  ;;  %v649_v31 = vsub.s32 6, %v590_v5 }
 0x132   : > { %v364_v33 = vadd.f32 1e-05, %v362_v32 }
 0x133   : > { %v361_v34 = vpop.xlane.xlu1 %360 }
 0x134   : > { %837 = vrsqrt.f32 %v364_v33  ;;  %v363_v35 = vmul.f32 0.03125, %v361_v34 }
 0x136   : > { %v365_v36 = vadd.f32 1e-05, %v363_v35 }
 0x138   : > { %839 = vrsqrt.f32 %v365_v36 }
 0x141   : > { %v838_v37 = vpop.eup %837 }
 0x142   : > { %v368_v39 = vmul.f32 %v838_v37, %v933_v7  ;;  %v591_v7 = vsub.s32 0, %v590_v5 }
 0x144   : > { %v377_v41 = vmul.f32 %v745_v38, %v368_v39  ;;  %v640_v39 = vrot.slane %v586_v10, %v639_v24 }
 0x145   : > { %v840_v42 = vpop.eup %839 }
 0x146   : > { %v369_v43 = vmul.f32 %v840_v42, %v938_v11  ;;  %v386_v44 = vadd.f32 %v746_v40, %v377_v41  ;;  %v592_v11 = vrot.slane %v586_v10, %v591_v7 }
 0x148   : > { %v378_v45 = vmul.f32 %v745_v38, %v369_v43  ;;  %790 = vmatprep.mubr.msk.f32.mxu0 %vm342_vm1, %v386_v44 }
 0x14a   : > { %v387_v46 = vadd.f32 %v746_v40, %v378_v45 }
 0x14c   : > { %791 = vmatmul.mubr.msk.f32.vlgmr.msra.gmra.mxu0 %vm342_vm1, %v387_v46  ;;  %v650_v46 = vrot.slane %v586_v10, %v649_v31 }
 0x20c   : > { %v792_v52 = vpop.f32.mrf.mxu0 }
 0x20d   : > { %v477_v53 = vadd.f32 %v792_v52, %v747_v51 }
 0x20e   : > { %v471_v54 = vpop.f32.mrf.mxu0 }
 0x20f   : > { %v472_v55 = vadd.f32 %v747_v51, %v471_v54  ;;  %v481_v57 = vmax.f32 %v477_v53, 0.0 }
 0x211   : > { %v480_v56 = vmax.f32 %v472_v55, 0.0 }
 0x213   : > { %825 = vmatprep.mubr.f32.mxu1 %v480_v56 }
 0x214   : > { %826 = vmatmul.mubr.f32.vlgmr.msra.gmra.mxu1 %v481_v57 }
 0x2d4   : > { %v827_v59 = vpop.f32.mrf.mxu1 }
 0x2d5   : > { %v577_v60 = vadd.f32 %v827_v59, %v750_v58 }
 0x2d6   : > { %v571_v61 = vpop.f32.mrf.mxu1 }
 0x2d7   : > { %v581_v62 = vmul.f32 0.5, %v577_v60  ;;  %v572_v2 = vadd.f32 %v750_v58, %v571_v61  ;;  %v751_v58 = vld [vmem:[%s1045_s8] ss:$0 sm:$0xff] }
 0x2d9   : > { %v583_v3 = vadd.f32 %v581_v62, %v926_v1  ;;  %v580_v4 = vmul.f32 0.5, %v572_v2  ;;  %v629_v1 = vsub.s32 4, %v590_v5 }
 0x2db   : > { %585 = vst.msk [vmem:[#allocation2 + $0xb] sm:$0xff] %vm342_vm1, %v583_v3  ;;  %v582_v6 = vadd.f32 %v580_v4, %v924_v0  ;;  %v630_v30 = vrot.slane %v586_v10, %v629_v1 }
 0x2dd   : > { %584 = vst.msk [vmem:[#allocation2 + $0x3] sm:$0xff] %vm342_vm1, %v582_v6 }
 0x2e2   : > { %v616_v27 = vld [vmem:[#allocation2 + $0xb] sm:$0xff] }
 0x2e3   : > { %v626_v35 = vld [vmem:[#allocation2 + $0xc] sm:$0xff]  ;;  %v622_v38 = vmul.f32 %v620_v23, %v616_v27 }
 0x2e4   : > { %v587_v15 = vld [vmem:[#allocation2] sm:$0xff]  ;;  %v588_v16 = vld [vmem:[#allocation2 + $0x8] sm:$0xff]  ;;  %v632_v45 = vmul.f32 %v630_v30, %v626_v35 }
 0x2e5   : > { %v595_v17 = vld [vmem:[#allocation2 + $0x1] sm:$0xff]  ;;  %v593_v18 = vmul.f32 %v592_v11, %v587_v15  ;;  %v594_v19 = vmul.f32 %v592_v11, %v588_v16  ;;  %v596_v0 = vld [vmem:[#allocation2 + $0x9] sm:$0xff] }
 0x2e6   : > { %v601_v20 = vmul.f32 %v600_v12, %v595_v17  ;;  %v605_v21 = vld [vmem:[#allocation2 + $0x2] sm:$0xff]  ;;  %v606_v22 = vld [vmem:[#allocation2 + $0xa] sm:$0xff]  ;;  %v602_v25 = vmul.f32 %v600_v12, %v596_v0 }
 0x2e7   : > { %v615_v26 = vld [vmem:[#allocation2 + $0x3] sm:$0xff]  ;;  %v611_v29 = vmul.f32 %v610_v14, %v605_v21  ;;  %v612_v33 = vmul.f32 %v610_v14, %v606_v22  ;;  %v636_v42 = vld [vmem:[#allocation2 + $0xd] sm:$0xff] }
 0x2e8   : > { %v603_v28 = vadd.f32 %v601_v20, %v593_v18  ;;  %v604_v32 = vadd.f32 %v602_v25, %v594_v19  ;;  %v625_v34 = vld [vmem:[#allocation2 + $0x4] sm:$0xff]  ;;  %v621_v37 = vmul.f32 %v620_v23, %v615_v26  ;;  %v646_v49 = vld [vmem:[#allocation2 + $0xe] sm:$0xff]  ;;  %v642_v52 = vmul.f32 %v640_v39, %v636_v42 }
 0x2e9   : > { %v635_v41 = vld [vmem:[#allocation2 + $0x5] sm:$0xff]  ;;  %v631_v44 = vmul.f32 %v630_v30, %v625_v34  ;;  %v652_v56 = vmul.f32 %v650_v46, %v646_v49 }
 0x2ea   : > { %v613_v36 = vadd.f32 %v611_v29, %v603_v28  ;;  %v614_v40 = vadd.f32 %v612_v33, %v604_v32  ;;  %v645_v48 = vld [vmem:[#allocation2 + $0x6] sm:$0xff]  ;;  %v641_v51 = vmul.f32 %v640_v39, %v635_v41 }
 0x2eb   : > { %v651_v55 = vmul.f32 %v650_v46, %v645_v48 }
 0x2ec   : > { %v623_v43 = vadd.f32 %v621_v37, %v613_v36  ;;  %v624_v47 = vadd.f32 %v622_v38, %v614_v40 }
 0x2ee   : > { %v633_v50 = vadd.f32 %v631_v44, %v623_v43  ;;  %v634_v53 = vadd.f32 %v632_v45, %v624_v47 }
 0x2f0   : > { %v643_v54 = vadd.f32 %v641_v51, %v633_v50  ;;  %v644_v57 = vadd.f32 %v642_v52, %v634_v53 }
 0x2f2   : > { %v653_v59 = vadd.f32 %v651_v55, %v643_v54  ;;  %v654_v60 = vadd.f32 %v652_v56, %v644_v57 }
 0x2f4   : > { %v662_v61 = vadd.f32 %v751_v58, %v653_v59  ;;  %v663_v62 = vadd.f32 %v751_v58, %v654_v60 }
 0x2f6   : > { %v752_v63 = vmul.f32 -1.442695, %v662_v61  ;;  %v753_v2 = vmul.f32 -1.442695, %v663_v62 }
 0x2f8   : > { %841 = vpow2.f32 %v752_v63 }
 0x2f9   : > { %843 = vpow2.f32 %v753_v2 }
 0x305   : > { %v842_v3 = vpop.eup %841 }
 0x306   : > { %v844_v4 = vpop.eup %843  ;;  %v670_v5 = vadd.f32 1.0, %v842_v3 }
 0x307   : > { %v671_v6 = vadd.f32 1.0, %v844_v4 }
 0x308   : > { %845 = vrcp.f32 %v670_v5 }
 0x309   : > { %847 = vrcp.f32 %v671_v6 }
 0x315   : > { %v846_v7 = vpop.eup %845 }
 0x316   : > { %v848_v8 = vpop.eup %847  ;;  %v676_v9 = vmul.f32 %v846_v7, %v662_v61 }
 0x317   : > { %v677_v10 = vmul.f32 %v848_v8, %v663_v62 }
 0x318   : > { %678 = vst.msk [vmem:[%s922_s18] sm:$0xff] %vm342_vm1, %v676_v9 }
 0x319   : > { %679 = vst.msk [vmem:[%s922_s18 + $0x8] sm:$0xff] %vm342_vm1, %v677_v10 }
 0x31a PF: > { %s19_s30 = sadd.s32 1, %s855_s30  }
 0x31b   : > { %p16_p5 = scmp.ge.s32.totalorder %s19_s30, 4  }
 0x31d   :  { %18 = sbr.rel (!%p16_p5) target bundleno = 1 (0x1), region = 90 }

</bundles_post_ra>
